<compile_context>
chip_gen: v7x
topology: tpu7x:2x2x1
jax: 0.10.0
libtpu: 0.0.40
codegen_flags: <defaults>
</compile_context>

<pallas_src>
import functools
import math

import jax
import jax.numpy as jnp
from jax.experimental import pallas as pl
from jax.experimental.pallas import tpu as pltpu

EPS = 1e-5    # nn.LayerNorm default
LANE = 128    # TPU vreg lane width


def _cdiv(a, b):
    return (a + b - 1) // b


def _round_up(a, b):
    return _cdiv(a, b) * b


def _vmem_capacity_bytes():
    """Per-TensorCore VMEM budget (conservative)."""
    try:
        cap = int(pltpu.get_tpu_info().vmem_capacity_bytes)
    except Exception:
        cap = 64 << 20
    # v7x has 64 MiB per TC; the query may report per-chip capacity.  Clamp to
    # the per-TC floor so "parallel" megacore sharding never over-subscribes a
    # core.  Costs ~1% of roofline at most on 128 MiB parts (tile sizes for a
    # mem-bound op saturate well below this budget anyway).
    return min(cap, 64 << 20)


def _pick_row_tile(rows, features, itemsize, vmem_cap):
    """Largest row tile whose full VMEM working set (I/O double-buffers + f32
    intermediates) fits a safe budget, while keeping >= ~8 grid steps."""
    # sub-32-bit dtypes pack along sublanes: 8 rows (f32) / 16 (bf16) / 32 (i8)
    packing = 8 * max(1, 4 // itemsize)
    if rows <= packing:
        return rows  # single ragged block; full-dim block is always legal

    f_lanes = _round_up(features, LANE)  # Mosaic pads the tile to lane width
    # per-row VMEM bytes:
    #   x, y, out tiles, double-buffered            -> 6 * f_lanes * itemsize
    #   f32 intermediates (add, centered, out-f32)  -> 3 * f_lanes * 4
    per_row = 6 * f_lanes * itemsize + 3 * f_lanes * 4
    budget = vmem_cap // 2
    tile = budget // per_row
    tile = max(packing, min(int(tile), 1024))
    tile = (tile // packing) * packing
    tile = min(tile, _round_up(rows, packing))

    # Keep >= ~8 grid steps (2 TensorCores x ~4 pipeline steps) when the
    # problem is big enough: restores DMA/compute overlap per core on v7x and
    # amortizes the ~0.35us/step overhead without hurting the roofline.
    min_steps = 8
    if rows // min_steps >= packing:
        cap = max(packing, ((rows // min_steps) // packing) * packing)
        tile = min(tile, cap)
    return tile


def addnorm_kernel(x_ref, y_ref, gamma_ref, beta_ref, o_ref, *, inv_features):
    # dropout (eval/inference mode) is identity -> plain residual add
    add = x_ref[...].astype(jnp.float32) + y_ref[...].astype(jnp.float32)
    # Two-pass LayerNorm stats in f32 over the VMEM-resident tile: no extra
    # HBM traffic and no E[x^2]-mean^2 cancellation.
    mean = jnp.sum(add, axis=-1, keepdims=True) * inv_features
    centered = add - mean
    var = jnp.sum(centered * centered, axis=-1, keepdims=True) * inv_features
    inv_std = jax.lax.rsqrt(var + EPS)
    out = centered * inv_std * gamma_ref[...].astype(jnp.float32) \
          + beta_ref[...].astype(jnp.float32)
    # single fused store (keeps the v5e single-vst epilogue happy)
    o_ref[...] = out.astype(o_ref.dtype)


def add_normalization(x, y, gamma, beta, *, row_tile=None):
    """x, y: (..., features); gamma, beta: (features,). Returns LayerNorm(x + y)."""
    assert x.shape == y.shape
    features = x.shape[-1]
    assert gamma.shape == (features,) and beta.shape == (features,)

    orig_shape = x.shape
    rows = int(math.prod(orig_shape[:-1]))
    # Row-major flatten of leading dims is a free metadata reshape (no HBM pass).
    x2 = x.reshape(rows, features)
    y2 = y.reshape(rows, features)
    gamma2d = gamma.reshape(1, features)
    beta2d = beta.reshape(1, features)

    itemsize = jnp.dtype(x.dtype).itemsize
    vmem_cap = _vmem_capacity_bytes()
    if row_tile is None:
        row_tile = _pick_row_tile(rows, features, itemsize, vmem_cap)

    grid = (pl.cdiv(rows, row_tile),)

    # VMEM working set: double-buffered x/y/out tiles + f32 intermediates
    # + resident gamma/beta, with 2x headroom for compiler scratch.
    f_lanes = _round_up(features, LANE)
    io_tile = row_tile * f_lanes * itemsize
    working = 6 * io_tile + 3 * row_tile * f_lanes * 4 + 2 * 8 * f_lanes * 4
    vmem_limit = int(min(int(0.9 * vmem_cap), max(2 * working, 32 << 20)))

    kernel = functools.partial(addnorm_kernel, inv_features=1.0 / features)

    out = pl.pallas_call(
        kernel,
        out_shape=jax.ShapeDtypeStruct((rows, features), x.dtype),
        grid_spec=pltpu.PrefetchScalarGridSpec(
            num_scalar_prefetch=0,
            grid=grid,
            in_specs=[
                # Last block dim equals the full feature dim -> legal for any
                # feature count; ragged trailing row block is masked by Pallas.
                pl.BlockSpec((row_tile, features), lambda i: (i, 0)),
                pl.BlockSpec((row_tile, features), lambda i: (i, 0)),
                # gamma/beta: whole (tiny) array resident in VMEM once
                pl.BlockSpec(memory_space=pltpu.MemorySpace.VMEM),
                pl.BlockSpec(memory_space=pltpu.MemorySpace.VMEM),
            ],
            out_specs=pl.BlockSpec((row_tile, features), lambda i: (i, 0)),
        ),
        compiler_params=pltpu.CompilerParams(
            dimension_semantics=("parallel",),
            vmem_limit_bytes=vmem_limit,
        ),
    )(x2, y2, gamma2d, beta2d)

    return out.reshape(orig_shape)


if __name__ == "__main__":
    # Small shapes consistent with the transformer block: batch=2, seq=8, features=32
    batch, seq, features = 2, 8, 32

    key = jax.random.PRNGKey(0)
    kx, ky = jax.random.split(key)
    x = jax.random.normal(kx, (batch, seq, features), dtype=jnp.float32)
    y = jax.random.normal(ky, (batch, seq, features), dtype=jnp.float32)

    # Deterministic parameter init (nn.LayerNorm defaults: weight=1, bias=0)
    gamma = jnp.ones((features,), dtype=jnp.float32)
    beta = jnp.zeros((features,), dtype=jnp.float32)

    out = add_normalization(x, y, gamma, beta)
    out = jax.block_until_ready(out)

    # Pure-JAX reference check (dropout in eval mode == identity)
    add = x + y
    mean = jnp.mean(add, axis=-1, keepdims=True)
    var = jnp.mean((add - mean) ** 2, axis=-1, keepdims=True)
    ref = (add - mean) / jnp.sqrt(var + EPS) * gamma + beta

    assert out.shape == ref.shape
    assert jnp.allclose(out, ref, atol=1e-4, rtol=1e-4), "mismatch vs reference"

    print("KERNEL_OK")
</pallas_src>

<mosaic_0001>
module attributes {stable_mosaic.version = 11 : i64} {
  func.func @addnorm_kernel(%arg0: i32, %arg1: memref<16x32xf32, #tpu.memory_space<vmem>>, %arg2: memref<16x32xf32, #tpu.memory_space<vmem>>, %arg3: memref<1x32xf32, #tpu.memory_space<vmem>>, %arg4: memref<1x32xf32, #tpu.memory_space<vmem>>, %arg5: memref<16x32xf32, #tpu.memory_space<vmem>>) attributes {dimension_semantics = [#tpu.dimension_semantics<parallel>], iteration_bounds = array<i64: 1>, scalar_prefetch = 0 : i64, scratch_operands = 0 : i64, tpu.core_type = #tpu.core_type<tc>, window_params = [{transform_indices = @transform_0, window_bounds = array<i64: 16, 32>}, {transform_indices = @transform_1, window_bounds = array<i64: 16, 32>}, {pipeline_mode = #tpu.pipeline_mode<synchronous>, transform_indices = @transform_2, window_bounds = array<i64: 1, 32>}, {pipeline_mode = #tpu.pipeline_mode<synchronous>, transform_indices = @transform_3, window_bounds = array<i64: 1, 32>}, {transform_indices = @transform_4, window_bounds = array<i64: 16, 32>}]} {
    %c0 = arith.constant 0 : index
    %c0_0 = arith.constant 0 : index
    %0 = vector.load %arg1[%c0, %c0_0] : memref<16x32xf32, #tpu.memory_space<vmem>>, vector<16x32xf32>
    %c0_1 = arith.constant 0 : index
    %c0_2 = arith.constant 0 : index
    %1 = vector.load %arg2[%c0_1, %c0_2] : memref<16x32xf32, #tpu.memory_space<vmem>>, vector<16x32xf32>
    %2 = arith.addf %0, %1 : vector<16x32xf32>
    %cst = arith.constant dense<0.000000e+00> : vector<16xf32>
    %3 = vector.multi_reduction <add>, %2, %cst [1] : vector<16x32xf32> to vector<16xf32>
    %4 = vector.shape_cast %3 : vector<16xf32> to vector<16x1xf32>
    %cst_3 = arith.constant 3.125000e-02 : f32
    %5 = vector.broadcast %cst_3 : f32 to vector<16x1xf32>
    %6 = arith.mulf %4, %5 : vector<16x1xf32>
    %7 = vector.broadcast %6 : vector<16x1xf32> to vector<16x32xf32>
    %8 = arith.subf %2, %7 : vector<16x32xf32>
    %9 = arith.mulf %8, %8 : vector<16x32xf32>
    %cst_4 = arith.constant dense<0.000000e+00> : vector<16xf32>
    %10 = vector.multi_reduction <add>, %9, %cst_4 [1] : vector<16x32xf32> to vector<16xf32>
    %11 = vector.shape_cast %10 : vector<16xf32> to vector<16x1xf32>
    %cst_5 = arith.constant 3.125000e-02 : f32
    %12 = vector.broadcast %cst_5 : f32 to vector<16x1xf32>
    %13 = arith.mulf %11, %12 : vector<16x1xf32>
    %cst_6 = arith.constant 9.99999974E-6 : f32
    %14 = vector.broadcast %cst_6 : f32 to vector<16x1xf32>
    %15 = arith.addf %13, %14 : vector<16x1xf32>
    %16 = math.rsqrt %15 : vector<16x1xf32>
    %17 = vector.broadcast %16 : vector<16x1xf32> to vector<16x32xf32>
    %18 = arith.mulf %8, %17 : vector<16x32xf32>
    %c0_7 = arith.constant 0 : index
    %c0_8 = arith.constant 0 : index
    %19 = vector.load %arg3[%c0_7, %c0_8] : memref<1x32xf32, #tpu.memory_space<vmem>>, vector<1x32xf32>
    %20 = vector.broadcast %19 : vector<1x32xf32> to vector<16x32xf32>
    %21 = arith.mulf %18, %20 : vector<16x32xf32>
    %c0_9 = arith.constant 0 : index
    %c0_10 = arith.constant 0 : index
    %22 = vector.load %arg4[%c0_9, %c0_10] : memref<1x32xf32, #tpu.memory_space<vmem>>, vector<1x32xf32>
    %23 = vector.broadcast %22 : vector<1x32xf32> to vector<16x32xf32>
    %24 = arith.addf %21, %23 : vector<16x32xf32>
    %c0_11 = arith.constant 0 : index
    %c0_12 = arith.constant 0 : index
    %25 = vector.load %arg5[%c0_11, %c0_12] : memref<16x32xf32, #tpu.memory_space<vmem>>, vector<16x32xf32>
    tpu.vector_store %arg5[%c0_11, %c0_12], %24 {strides = array<i32>} : memref<16x32xf32, #tpu.memory_space<vmem>>, vector<16x32xf32>,
    return
  }
  func.func @transform_0(%arg0: i32) -> (i32, i32) {
    %c0_i32 = arith.constant 0 : i32
    %c0_i32_0 = arith.constant 0 : i32
    return %arg0, %c0_i32 : i32, i32
  }
  func.func @transform_1(%arg0: i32) -> (i32, i32) {
    %c0_i32 = arith.constant 0 : i32
    %c0_i32_0 = arith.constant 0 : i32
    return %arg0, %c0_i32 : i32, i32
  }
  func.func @transform_2(%arg0: i32) -> (i32, i32) {
    %c0_i32 = arith.constant 0 : i32
    %c0_i32_0 = arith.constant 0 : i32
    %c0_i32_1 = arith.constant 0 : i32
    return %c0_i32, %c0_i32_0 : i32, i32
  }
  func.func @transform_3(%arg0: i32) -> (i32, i32) {
    %c0_i32 = arith.constant 0 : i32
    %c0_i32_0 = arith.constant 0 : i32
    %c0_i32_1 = arith.constant 0 : i32
    return %c0_i32, %c0_i32_0 : i32, i32
  }
  func.func @transform_4(%arg0: i32) -> (i32, i32) {
    %c0_i32 = arith.constant 0 : i32
    %c0_i32_0 = arith.constant 0 : i32
    return %arg0, %c0_i32 : i32, i32
  }
}

</mosaic_0001>

<bundles_post_ra>
// kernel: tpu_custom_call.1
= control target key start
LH: loop header
LB: loop body
LE: loop exit
PB: predicated region body
PF: predicated region fallthrough
CT: control target
= control target key end

     0   :  { %9 = vsyncpa [#allocation3], 0  ;;  %s287_s0 = inlined_call_operand.hbm [shape: f32[16,32], index: 0, kind: input, shape index: {}]   ;;  %s288_s1 = inlined_call_operand.hbm [shape: f32[16,32], index: 1, kind: input, shape index: {}]   ;;  %s289_s2 = inlined_call_operand.vmem [shape: f32[1,32], index: 2, kind: input, shape index: {}]   ;;  %s290_s3 = inlined_call_operand.vmem [shape: f32[1,32], index: 3, kind: input, shape index: {}]   ;;  %s291_s4 = inlined_call_operand.hbm [shape: f32[16,32], index: 4, kind: output, shape index: {}]  }
   0x1   :  { %10 = vsyncpa [#allocation6], 0 }
   0x2   :  { %11 = vsyncpa [#allocation4], 0  ;;  %s200_s15 = smov [#allocation2]   ;;  %s128_s19 = scalar_lea.hbm %s287_s0, 256 }
   0x3   :  { %s17_s16 = sshll.u32 %s200_s15, 4  ;;  %p129_p0 = scmp.ne.s32.totalorder %s287_s0, %s128_s19  ;;  %s18_s16 = int_to_ptr.vmem [resolvable:$true] %s17_s16 }
   0x4   :  { %p132_p1 = scmp.lt.u32.totalorder %s128_s19, %s287_s0 }
   0x6   :  { %p134_p2 = pnand %p132_p1, %p129_p0 }
   0x8   :  { %137 = shalt.err (!%p134_p2)
}
   0x9   :  { %s138_s24 = scalar_lea.vmem %s18_s16, 256  ;;  %p143_p4 = scmp.lt.s32.totalorder %s18_s16, %s18_s16 }
   0xa   :  { %p139_p3 = scmp.ne.s32.totalorder %s18_s16, %s138_s24  ;;  %p144_p5 = scmp.lt.s32.totalorder %s138_s24, %s138_s24 }
   0xc   :  { %p145_p6 = por %p144_p5, %p143_p4 }
   0xe   :  { %p146_p7 = pnand %p145_p6, %p139_p3 }
  0x10   :  { %149 = shalt.err (!%p146_p7)
}
  0x11   :  { %s201_s25 = smov 128   ;;  %s202_s26 = smov 8  }
  0x12   :  { %23 = dma.hbm_to_vmem [thread:$0]  %s287_s0, 256, %s18_s16, [#allocation3], %s201_s25, %s201_s25, %s202_s26  }
  0x13   :  { %s203_s29 = smov [#allocation5]   ;;  %s150_s7 = scalar_lea.hbm %s288_s1, 256 }
  0x14   :  { %s29_s30 = sshll.u32 %s203_s29, 4  ;;  %p151_p8 = scmp.ne.s32.totalorder %s288_s1, %s150_s7  ;;  %s30_s30 = int_to_ptr.vmem [resolvable:$true] %s29_s30 }
  0x15   :  { %p154_p9 = scmp.lt.u32.totalorder %s150_s7, %s288_s1 }
  0x17   :  { %p156_p10 = pnand %p154_p9, %p151_p8 }
  0x19   :  { %159 = shalt.err (!%p156_p10)
}
  0x1a   :  { %s160_s12 = scalar_lea.vmem %s30_s30, 256  ;;  %p165_p12 = scmp.lt.s32.totalorder %s30_s30, %s30_s30 }
  0x1b   :  { %p161_p11 = scmp.ne.s32.totalorder %s30_s30, %s160_s12  ;;  %p166_p13 = scmp.lt.s32.totalorder %s160_s12, %s160_s12 }
  0x1d   :  { %p167_p0 = por %p166_p13, %p165_p12 }
  0x1f   :  { %p168_p1 = pnand %p167_p0, %p161_p11 }
  0x21   :  { %171 = shalt.err (!%p168_p1)
}
  0x22   :  { %35 = dma.hbm_to_vmem [thread:$0]  %s288_s1, 256, %s30_s30, [#allocation6], %s201_s25, %s201_s25, %s202_s26  }
  0x23   :  { %194 = dma.done.wait [#allocation3], 256  }
  0x24   :  { %195 = vsyncadd [#allocation3], 4294967040 }
  0x25   :  { %196 = dma.done.wait [#allocation6], 256  }
  0x26   :  { %197 = vsyncadd [#allocation6], 4294967040  ;;  %v46_v0 = vld [vmem:[#allocation2] sm:$0xff]  ;;  %v48_v1 = vld [vmem:[#allocation5] sm:$0xff]  ;;  %vm52_vm0 = vcmask 261120   ;;  %s204_s17 = smov [#allocation7]  }
  0x27   :  { %v47_v2 = vld [vmem:[#allocation2 + $0x8] sm:$0xff]  ;;  %v50_v3 = vadd.f32 %v48_v1, %v46_v0  ;;  %v49_v4 = vld [vmem:[#allocation5 + $0x8] sm:$0xff]  ;;  %v117_v25 = vld [vmem:[%s289_s2] ss:$0 sm:$0xff]  ;;  %s104_s18 = sshll.u32 %s204_s17, 4  ;;  %s105_s18 = int_to_ptr.vmem [resolvable:$true] %s104_s18 }
  0x28   :  { %v51_v5 = vadd.f32 %v49_v4, %v47_v2  ;;  %v118_v27 = vld [vmem:[%s290_s3] ss:$0 sm:$0xff]  ;;  %s172_s19 = scalar_lea.vmem %s105_s18, 256  ;;  %p177_p3 = scmp.lt.s32.totalorder %s105_s18, %s105_s18 }
  0x29   :  { %v53_v6 = vsel %vm52_vm0, %v50_v3, 0.0  ;;  %p173_p2 = scmp.ne.s32.totalorder %s105_s18, %s172_s19  ;;  %p178_p4 = scmp.lt.s32.totalorder %s172_s19, %s172_s19 }
  0x2a   :  { %54 = vadd.xlane.f32.xlu0 %v53_v6  ;;  %v56_v7 = vsel %vm52_vm0, %v51_v5, 0.0 }
  0x2b   :  { %p179_p5 = por %p178_p4, %p177_p3 }
  0x2d   :  { %p180_p6 = pnand %p179_p5, %p173_p2 }
  0x2e   :  { %57 = vadd.xlane.f32.xlu0 %v56_v7 }
  0xb7   :  { %v55_v8 = vpop.xlane.xlu0 %54 }
  0xb8   :  { %v59_v9 = vmul.f32 0.03125, %v55_v8 }
  0xba   :  { %v61_v10 = vsub.f32 %v50_v3, %v59_v9 }
  0xbb   :  { %v58_v11 = vpop.xlane.xlu0 %57 }
  0xbc   :  { %v60_v12 = vmul.f32 0.03125, %v58_v11  ;;  %v63_v13 = vmul.f32 %v61_v10, %v61_v10 }
  0xbe   :  { %v62_v14 = vsub.f32 %v51_v5, %v60_v12  ;;  %v65_v15 = vsel %vm52_vm0, %v63_v13, 0.0 }
  0xbf   :  { %66 = vadd.xlane.f32.xlu1 %v65_v15 }
  0xc0   :  { %v64_v16 = vmul.f32 %v62_v14, %v62_v14 }
  0xc2   :  { %v68_v17 = vsel %vm52_vm0, %v64_v16, 0.0 }
  0xc3   :  { %69 = vadd.xlane.f32.xlu1 %v68_v17 }
 0x14c   :  { %v67_v18 = vpop.xlane.xlu1 %66 }
 0x14d   :  { %v71_v19 = vmul.f32 0.03125, %v67_v18 }
 0x14f   :  { %v73_v20 = vadd.f32 1e-05, %v71_v19 }
 0x150   :  { %v70_v21 = vpop.xlane.xlu1 %69 }
 0x151   :  { %124 = vrsqrt.f32 %v73_v20  ;;  %v72_v22 = vmul.f32 0.03125, %v70_v21 }
 0x153   :  { %v74_v23 = vadd.f32 1e-05, %v72_v22 }
 0x155   :  { %126 = vrsqrt.f32 %v74_v23 }
 0x15b   :  { %v125_v24 = vpop.eup %124 }
 0x15c   :  { %v77_v26 = vmul.f32 %v125_v24, %v61_v10 }
 0x15e   :  { %v86_v28 = vmul.f32 %v117_v25, %v77_v26 }
 0x15f   :  { %v127_v29 = vpop.eup %126 }
 0x160   :  { %v78_v30 = vmul.f32 %v127_v29, %v62_v14  ;;  %v95_v31 = vadd.f32 %v118_v27, %v86_v28 }
 0x162   :  { %v87_v32 = vmul.f32 %v117_v25, %v78_v30  ;;  %97 = vst.msk [vmem:[#allocation7] sm:$0xff] %vm52_vm0, %v95_v31 }
 0x164   :  { %v96_v33 = vadd.f32 %v118_v27, %v87_v32 }
 0x166   :  { %98 = vst.msk [vmem:[#allocation7 + $0x8] sm:$0xff] %vm52_vm0, %v96_v33 }
 0x167   :  { %183 = shalt.err (!%p180_p6)
}
 0x168   :  { %s184_s20 = scalar_lea.hbm %s291_s4, 256 }
 0x169   :  { %p185_p7 = scmp.ne.s32.totalorder %s291_s4, %s184_s20  ;;  %p188_p8 = scmp.lt.u32.totalorder %s184_s20, %s291_s4 }
 0x16b   :  { %p190_p9 = pnand %p188_p8, %p185_p7 }
 0x16d   :  { %193 = shalt.err (!%p190_p9)
}
 0x16e   :  { %110 = dma.vmem_to_hbm [thread:$0]  %s105_s18, 256, %s291_s4, [#allocation4], %s201_s25, %s201_s25, %s202_s26  }
 0x16f   :  { %198 = dma.done.wait [#allocation4], 256  }
 0x170   :  { %199 = vsyncadd [#allocation4], 4294967040 }
 0x171   :  { %114 = vsyncpa [#allocation3], 1 }
 0x172   :  { %115 = vsyncpa [#allocation6], 1 }
 0x173   :  { %116 = vsyncpa [#allocation4], 1 }

</bundles_post_ra>
